<compile_context>
chip_gen: v5e
topology: v5e:2x2
jax: 0.10.0
libtpu: 0.0.40
codegen_flags: <defaults>
</compile_context>

<pallas_src>
import functools

import jax
import jax.numpy as jnp
from jax.experimental import pallas as pl
from jax.experimental.pallas import tpu as pltpu


def _round_up(x, m):
    return ((x + m - 1) // m) * m


def _cp_sparse_degree_kernel(z_ref, w_ref, cw_ref, cb_ref, o_ref, *, degree, k_pad):
    # z_ref : (tn, d)                 row tile of flattened input
    # w_ref : (d, degree * k_pad)     fused, pre-transposed, zero-padded masked U_i weights
    # cw_ref: (k_pad, o_pad)          pre-transposed, zero-padded layer_C weight
    # cb_ref: (1, o_pad)              zero-padded layer_C bias
    # o_ref : (tn, o_pad)             lane-dense output tile
    z = z_ref[...]                                                            # (tn, d)

    # One fused MXU matmul for all `degree` projections: T = z @ [W1^T | W2^T | ... ].
    t_all = jnp.dot(z, w_ref[...], preferred_element_type=jnp.float32)        # (tn, degree*k_pad)

    # out = z @ W1^T ; then out = (z @ Wi^T) * out + out  ==  out * (t_i + 1)
    out = t_all[:, :k_pad]
    for i in range(1, degree):
        t_i = t_all[:, i * k_pad:(i + 1) * k_pad]                             # lane-aligned slice
        out = out * (t_i + 1.0)

    # Final linear layer_C (pre-transposed): y = out @ C_w^T + C_b
    y = jnp.dot(out, cw_ref[...], preferred_element_type=jnp.float32) + cb_ref[...]
    o_ref[...] = y.astype(o_ref.dtype)


def cp_sparse_degree_pallas(z_flat, W_stack, C_w, C_b, *, degree, tile_n=512):
    N, d = z_flat.shape
    deg, k, d2 = W_stack.shape
    assert deg == degree and d2 == d
    o = C_w.shape[0]

    k_pad = _round_up(k, 128)
    o_pad = _round_up(o, 128)

    # --- Loop-invariant weight prep (done once, outside the kernel) ------------------------
    # Fused slab W_all: column block i holds (mask_i * U_i)^T, zero-padded on the rank axis.
    W_t = jnp.transpose(W_stack, (0, 2, 1))                                   # (degree, d, k)
    W_t = jnp.pad(W_t, ((0, 0), (0, 0), (0, k_pad - k)))                      # (degree, d, k_pad)
    W_all = jnp.transpose(W_t, (1, 0, 2)).reshape(d, degree * k_pad)          # (d, degree*k_pad)

    Cw_p = jnp.pad(C_w.T, ((0, k_pad - k), (0, o_pad - o)))                   # (k_pad, o_pad)
    Cb_p = jnp.pad(C_b.reshape(1, -1), ((0, 0), (0, o_pad - o)))              # (1, o_pad)

    # --- Row tiling: large tiles, pad N so arbitrary batch*seq works ------------------------
    tn = max(8, min(int(tile_n), _round_up(N, 8)))
    N_pad = _round_up(N, tn)
    if N_pad != N:
        z_flat = jnp.pad(z_flat, ((0, N_pad - N), (0, 0)))

    kernel = functools.partial(_cp_sparse_degree_kernel, degree=degree, k_pad=k_pad)

    y_pad = pl.pallas_call(
        kernel,
        out_shape=jax.ShapeDtypeStruct((N_pad, o_pad), z_flat.dtype),
        grid_spec=pltpu.PrefetchScalarGridSpec(
            num_scalar_prefetch=0,
            grid=(N_pad // tn,),
            in_specs=[
                pl.BlockSpec((tn, d), lambda i: (i, 0)),                      # z row tile
                pl.BlockSpec((d, degree * k_pad), lambda i: (0, 0)),          # fused weights
                pl.BlockSpec((k_pad, o_pad), lambda i: (0, 0)),               # layer_C weight
                pl.BlockSpec((1, o_pad), lambda i: (0, 0)),                   # layer_C bias
            ],
            out_specs=pl.BlockSpec((tn, o_pad), lambda i: (i, 0)),
        ),
        compiler_params=pltpu.CompilerParams(
            dimension_semantics=("parallel",),
        ),
    )(z_flat, W_all, Cw_p, Cb_p)

    return y_pad[:N, :o]


def make_params(key, degree, d, k, o, l_offset=0, u_offset=0, dtype=jnp.float32):
    """Deterministic parameter construction mirroring CP_sparse_degree.__init__ shapes/masks."""
    keys = jax.random.split(key, degree + 2)
    base = jnp.ones((k, d), dtype)
    if d > k:
        mask_odd = jnp.triu(base, k=u_offset)
        mask_even = jnp.tril(base, k=l_offset)
    else:
        mask_odd = jnp.tril(base, k=l_offset)
        mask_even = jnp.triu(base, k=u_offset)

    Ws = []
    for i in range(1, degree + 1):
        w = jax.random.uniform(keys[i - 1], (k, d), dtype, minval=-0.1, maxval=0.1)
        mask = mask_odd if (i % 2 == 1) else mask_even
        Ws.append(w * mask)  # masked at init AND masked again in forward (idempotent)
    W_stack = jnp.stack(Ws, axis=0)  # (degree, k, d)

    C_w = jax.random.uniform(keys[degree], (o, k), dtype, minval=-0.1, maxval=0.1)
    C_b = jax.random.uniform(keys[degree + 1], (1, o), dtype, minval=-0.1, maxval=0.1)
    return W_stack, C_w, C_b


def cp_sparse_degree_forward(x, W_stack, C_w, C_b, *, degree, tile_n=512):
    """Glue: flatten leading dims, run Pallas kernel, restore shape."""
    d = x.shape[-1]
    lead = x.shape[:-1]
    z_flat = x.reshape(-1, d)
    y = cp_sparse_degree_pallas(z_flat, W_stack, C_w, C_b, degree=degree, tile_n=tile_n)
    return y.reshape(*lead, C_w.shape[0])


def reference_forward(x, W_stack, C_w, C_b, *, degree):
    """Plain-JAX reference matching the torch forward semantics."""
    d = x.shape[-1]
    lead = x.shape[:-1]
    z = x.reshape(-1, d)
    out = z @ W_stack[0].T
    for i in range(1, degree):
        out = (z @ W_stack[i].T) * out + out
    y = out @ C_w.T + C_b
    return y.reshape(*lead, C_w.shape[0])


if __name__ == "__main__":
    degree = 3
    d, k, o = 32, 16, 24          # input_dimension > rank branch (triu/tril masks)
    batch, seq = 2, 8             # leading dims -> N = 16 flattened rows

    key = jax.random.PRNGKey(0)
    kx, kp, kx2 = jax.random.split(key, 3)
    x = jax.random.normal(kx, (batch, seq, d), jnp.float32)

    W_stack, C_w, C_b = make_params(kp, degree, d, k, o)

    # Small-shape check (matches the torch module's toy sizes).
    y = jax.block_until_ready(cp_sparse_degree_forward(x, W_stack, C_w, C_b, degree=degree))
    y_ref = reference_forward(x, W_stack, C_w, C_b, degree=degree)
    assert y.shape == (batch, seq, o)
    assert jnp.allclose(y, y_ref, atol=1e-5, rtol=1e-5)

    # Larger check exercising row padding + multi-step grid with big lane-dense tiles.
    x2 = jax.random.normal(kx2, (4, 300, d), jnp.float32)   # N = 1200 -> padded to 1536, grid = 3
    y2 = jax.block_until_ready(
        cp_sparse_degree_forward(x2, W_stack, C_w, C_b, degree=degree, tile_n=512))
    y2_ref = reference_forward(x2, W_stack, C_w, C_b, degree=degree)
    assert y2.shape == (4, 300, o)
    assert jnp.allclose(y2, y2_ref, atol=1e-4, rtol=1e-4)

    print("KERNEL_OK")
</pallas_src>

<mosaic_0001>
module attributes {stable_mosaic.version = 11 : i64} {
  func.func @_cp_sparse_degree_kernel(%arg0: i32, %arg1: memref<16x32xf32, #tpu.memory_space<vmem>>, %arg2: memref<32x384xf32, #tpu.memory_space<vmem>>, %arg3: memref<128x128xf32, #tpu.memory_space<vmem>>, %arg4: memref<1x128xf32, #tpu.memory_space<vmem>>, %arg5: memref<16x128xf32, #tpu.memory_space<vmem>>) attributes {dimension_semantics = [#tpu.dimension_semantics<parallel>], iteration_bounds = array<i64: 1>, scalar_prefetch = 0 : i64, scratch_operands = 0 : i64, tpu.core_type = #tpu.core_type<tc>, window_params = [{transform_indices = @transform_0, window_bounds = array<i64: 16, 32>}, {pipeline_mode = #tpu.pipeline_mode<synchronous>, transform_indices = @transform_1, window_bounds = array<i64: 32, 384>}, {pipeline_mode = #tpu.pipeline_mode<synchronous>, transform_indices = @transform_2, window_bounds = array<i64: 128, 128>}, {pipeline_mode = #tpu.pipeline_mode<synchronous>, transform_indices = @transform_3, window_bounds = array<i64: 1, 128>}, {transform_indices = @transform_4, window_bounds = array<i64: 16, 128>}]} {
    %c0 = arith.constant 0 : index
    %c0_0 = arith.constant 0 : index
    %0 = vector.load %arg1[%c0, %c0_0] : memref<16x32xf32, #tpu.memory_space<vmem>>, vector<16x32xf32>
    %c0_1 = arith.constant 0 : index
    %c0_2 = arith.constant 0 : index
    %1 = vector.load %arg2[%c0_1, %c0_2] : memref<32x384xf32, #tpu.memory_space<vmem>>, vector<32x384xf32>
    %cst = arith.constant dense<0.000000e+00> : vector<16x384xf32>
    %2 = tpu.matmul %0, %1, %cst {dimension_numbers = #tpu.dot_dimension_numbers<[1], [0], [0], [1], [0, 0, 1, 1], [], []>} : vector<16x32xf32>, vector<32x384xf32>, vector<16x384xf32> -> vector<16x384xf32>
    %3 = vector.extract_strided_slice %2 {offsets = [0, 0], sizes = [16, 128], strides = [1, 1]} : vector<16x384xf32> to vector<16x128xf32>
    %4 = vector.extract_strided_slice %2 {offsets = [0, 128], sizes = [16, 128], strides = [1, 1]} : vector<16x384xf32> to vector<16x128xf32>
    %cst_3 = arith.constant 1.000000e+00 : f32
    %5 = vector.broadcast %cst_3 : f32 to vector<16x128xf32>
    %6 = arith.addf %4, %5 : vector<16x128xf32>
    %7 = arith.mulf %3, %6 : vector<16x128xf32>
    %8 = vector.extract_strided_slice %2 {offsets = [0, 256], sizes = [16, 128], strides = [1, 1]} : vector<16x384xf32> to vector<16x128xf32>
    %cst_4 = arith.constant 1.000000e+00 : f32
    %9 = vector.broadcast %cst_4 : f32 to vector<16x128xf32>
    %10 = arith.addf %8, %9 : vector<16x128xf32>
    %11 = arith.mulf %7, %10 : vector<16x128xf32>
    %c0_5 = arith.constant 0 : index
    %c0_6 = arith.constant 0 : index
    %12 = vector.load %arg3[%c0_5, %c0_6] : memref<128x128xf32, #tpu.memory_space<vmem>>, vector<128x128xf32>
    %cst_7 = arith.constant dense<0.000000e+00> : vector<16x128xf32>
    %13 = tpu.matmul %11, %12, %cst_7 {dimension_numbers = #tpu.dot_dimension_numbers<[1], [0], [0], [1], [0, 0, 1, 1], [], []>} : vector<16x128xf32>, vector<128x128xf32>, vector<16x128xf32> -> vector<16x128xf32>
    %c0_8 = arith.constant 0 : index
    %c0_9 = arith.constant 0 : index
    %14 = vector.load %arg4[%c0_8, %c0_9] : memref<1x128xf32, #tpu.memory_space<vmem>>, vector<1x128xf32>
    %15 = vector.broadcast %14 : vector<1x128xf32> to vector<16x128xf32>
    %16 = arith.addf %13, %15 : vector<16x128xf32>
    %c0_10 = arith.constant 0 : index
    %c0_11 = arith.constant 0 : index
    %17 = vector.load %arg5[%c0_10, %c0_11] : memref<16x128xf32, #tpu.memory_space<vmem>>, vector<16x128xf32>
    tpu.vector_store %arg5[%c0_10, %c0_11], %16 {strides = array<i32>} : memref<16x128xf32, #tpu.memory_space<vmem>>, vector<16x128xf32>,
    return
  }
  func.func @transform_0(%arg0: i32) -> (i32, i32) {
    %c0_i32 = arith.constant 0 : i32
    %c0_i32_0 = arith.constant 0 : i32
    return %arg0, %c0_i32 : i32, i32
  }
  func.func @transform_1(%arg0: i32) -> (i32, i32) {
    %c0_i32 = arith.constant 0 : i32
    %c0_i32_0 = arith.constant 0 : i32
    %c0_i32_1 = arith.constant 0 : i32
    return %c0_i32, %c0_i32_0 : i32, i32
  }
  func.func @transform_2(%arg0: i32) -> (i32, i32) {
    %c0_i32 = arith.constant 0 : i32
    %c0_i32_0 = arith.constant 0 : i32
    %c0_i32_1 = arith.constant 0 : i32
    return %c0_i32, %c0_i32_0 : i32, i32
  }
  func.func @transform_3(%arg0: i32) -> (i32, i32) {
    %c0_i32 = arith.constant 0 : i32
    %c0_i32_0 = arith.constant 0 : i32
    %c0_i32_1 = arith.constant 0 : i32
    return %c0_i32, %c0_i32_0 : i32, i32
  }
  func.func @transform_4(%arg0: i32) -> (i32, i32) {
    %c0_i32 = arith.constant 0 : i32
    %c0_i32_0 = arith.constant 0 : i32
    return %arg0, %c0_i32 : i32, i32
  }
}

</mosaic_0001>

<bundles_post_ra>
// kernel: tpu_custom_call.1
= control target key start
LH: loop header
LB: loop body
LE: loop exit
PB: predicated region body
PF: predicated region fallthrough
CT: control target
= control target key end

     0   :  { %9 = vsyncpa [#allocation3], 0  ;;  %s408_s0 = inlined_call_operand.hbm [shape: f32[16,32], index: 0, kind: input, shape index: {}]   ;;  %s409_s1 = inlined_call_operand.hbm [shape: f32[32,384], index: 1, kind: input, shape index: {}]   ;;  %s410_s2 = inlined_call_operand.hbm [shape: f32[128,128], index: 2, kind: input, shape index: {}]   ;;  %s411_s3 = inlined_call_operand.vmem [shape: f32[1,128], index: 3, kind: input, shape index: {}]   ;;  %s412_s4 = inlined_call_operand.hbm [shape: f32[16,128], index: 4, kind: output, shape index: {}]  }
   0x1   :  { %10 = vsyncpa [#allocation6], 0  ;;  %s29_s17 = sshll.u32 %s409_s1, 4  ;;  %s30_s17 = int_to_ptr.hbm [resolvable:$true] %s29_s17 }
   0x2   :  { %11 = vsyncpa [#allocation4], 0  ;;  %s345_s18 = smov [#allocation5]   ;;  %s16_s22 = sshll.u32 %s408_s0, 4  ;;  %s17_s22 = int_to_ptr.hbm [resolvable:$true] %s16_s22 }
   0x3   :  { %s31_s19 = sshll.u32 %s345_s18, 4  ;;  %s346_s23 = smov 384   ;;  %s32_s19 = int_to_ptr.vmem [resolvable:$true] %s31_s19 }
   0x4   :  { %s347_s24 = smov 24   ;;  %s348_s25 = smov [#allocation2]  }
   0x5   :  { %37 = dma.hbm_to_vmem [thread:$0]  %s30_s17, 1536, %s32_s19, [#allocation6], %s346_s23, %s346_s23, %s347_s24  }
   0x6   :  { %s18_s26 = sshll.u32 %s348_s25, 4  ;;  %s349_s27 = smov 128   ;;  %s19_s26 = int_to_ptr.vmem [resolvable:$true] %s18_s26 }
   0x7   :  { %s350_s28 = smov 8   ;;  %s42_s30 = sshll.u32 %s410_s2, 4  ;;  %s43_s30 = int_to_ptr.hbm [resolvable:$true] %s42_s30 }
   0x8   :  { %24 = dma.hbm_to_vmem [thread:$0]  %s17_s22, 256, %s19_s26, [#allocation3], %s349_s27, %s349_s27, %s350_s28  }
   0x9   :  { %s351_s5 = smov [#allocation7]  }
   0xa   :  { %s44_s0 = sshll.u32 %s351_s5, 4  ;;  %s45_s0 = int_to_ptr.vmem [resolvable:$true] %s44_s0 }
   0xb   :  { %50 = dma.hbm_to_vmem [thread:$0]  %s43_s30, 2048, %s45_s0, [#allocation6], %s349_s27, %s349_s27, %s350_s28  }
   0xc   :  { %339 = dma.done.wait [#allocation3], 256  }
   0xd   :  { %340 = vsyncadd [#allocation3], 4294967040 }
   0xe   :  { %341 = dma.done.wait [#allocation6], 3584  }
   0xf   :  { %342 = vsyncadd [#allocation6], 4294963712  ;;  %v78_v0 = vld [vmem:[#allocation5 + $0x58] sm:$0xff]  ;;  %v75_v1 = vld [vmem:[#allocation5 + $0x40] sm:$0xff]  ;;  %vm79_vm0 = vcmask 261120   ;;  %s352_s7 = smov [#allocation8]  }
  0x10   :  { %v77_v2 = vld [vmem:[#allocation5 + $0x50] sm:$0xff]  ;;  %144 = vmatpush.msra.mxu2 %v78_v0  ;;  %v76_v3 = vld [vmem:[#allocation5 + $0x48] sm:$0xff]  ;;  %v74_v4 = vld [vmem:[#allocation5 + $0x38] sm:$0xff]  ;;  %s212_s8 = sshll.u32 %s352_s7, 4  ;;  %s214_s11 = sshll.u32 %s412_s4, 4  ;;  %s213_s8 = int_to_ptr.vmem [resolvable:$true] %s212_s8  ;;  %s215_s11 = int_to_ptr.hbm [resolvable:$true] %s214_s11 }
  0x11   :  { %121 = vmatpush.msra.mxu1 %v77_v2  ;;  %v72_v5 = vld [vmem:[#allocation5 + $0x28] sm:$0xff]  ;;  %98 = vmatpush.msra.mxu0 %v76_v3  ;;  %v73_v6 = vld [vmem:[#allocation5 + $0x30] sm:$0xff]  ;;  %v71_v7 = vld [vmem:[#allocation5 + $0x20] sm:$0xff] }
  0x12   :  { %145 = vmatpush.msra.mxu2 %v75_v1  ;;  %v70_v8 = vld [vmem:[#allocation5 + $0x18] sm:$0xff]  ;;  %v69_v9 = vld [vmem:[#allocation5 + $0x10] sm:$0xff]  ;;  %v68_v10 = vld [vmem:[#allocation5 + $0x8] sm:$0xff] }
  0x13   :  { %122 = vmatpush.msra.mxu1 %v74_v4  ;;  %99 = vmatpush.msra.mxu0 %v73_v6  ;;  %v178_v11 = vld [vmem:[#allocation7 + $0x78] sm:$0xff]  ;;  %v65_v12 = vld [vmem:[#allocation2] sm:$0xff]  ;;  %v67_v13 = vld [vmem:[#allocation5] sm:$0xff] }
  0x14   :  { %146 = vmatpush.msra.mxu2 %v72_v5  ;;  %183 = vmatpush.msra.mxu3 %v178_v11  ;;  %v177_v14 = vld [vmem:[#allocation7 + $0x70] sm:$0xff]  ;;  %v176_v15 = vld [vmem:[#allocation7 + $0x68] sm:$0xff]  ;;  %v175_v16 = vld [vmem:[#allocation7 + $0x60] sm:$0xff] }
  0x15   :  { %123 = vmatpush.msra.mxu1 %v71_v7  ;;  %100 = vmatpush.msra.mxu0 %v70_v8  ;;  %v174_v17 = vld [vmem:[#allocation7 + $0x58] sm:$0xff]  ;;  %v173_v19 = vld [vmem:[#allocation7 + $0x50] sm:$0xff]  ;;  %v172_v20 = vld [vmem:[#allocation7 + $0x48] sm:$0xff] }
  0x16   :  { %147 = vmatpush.msra.mxu2 %v69_v9  ;;  %184 = vmatpush.msra.mxu3 %v177_v14  ;;  %v66_v18 = vld [vmem:[#allocation2 + $0x8] sm:$0xff]  ;;  %v171_v21 = vld [vmem:[#allocation7 + $0x40] sm:$0xff]  ;;  %v169_v23 = vld [vmem:[#allocation7 + $0x30] sm:$0xff] }
  0x17   :  { %124 = vmatpush.msra.mxu1 %v68_v10  ;;  %232 = vmatmul.msk.f32.vlgmr.msra.gmra.mxu2 %vm79_vm0, %v65_v12  ;;  %v170_v22 = vld [vmem:[#allocation7 + $0x38] sm:$0xff]  ;;  %v168_v24 = vld [vmem:[#allocation7 + $0x28] sm:$0xff]  ;;  %v167_v25 = vld [vmem:[#allocation7 + $0x20] sm:$0xff] }
  0x18   :  { %230 = vmatmul.msk.f32.vlgmr.msra.gmra.mxu1 %vm79_vm0, %v65_v12  ;;  %101 = vmatpush.msra.mxu0 %v67_v13  ;;  %v166_v26 = vld [vmem:[#allocation7 + $0x18] sm:$0xff]  ;;  %v165_v27 = vld [vmem:[#allocation7 + $0x10] sm:$0xff]  ;;  %v164_v28 = vld [vmem:[#allocation7 + $0x8] sm:$0xff] }
  0x19   :  { %228 = vmatmul.msk.f32.vlgmr.msra.gmra.mxu0 %vm79_vm0, %v65_v12  ;;  %185 = vmatpush.msra.mxu3 %v176_v15  ;;  %v163_v29 = vld [vmem:[#allocation7] sm:$0xff]  ;;  %v242_v44 = vld [vmem:[%s411_s3] ss:$0 sm:$0xff] }
  0x1b   :  { %186 = vmatpush.msra.mxu3 %v175_v16 }
  0x1d   :  { %187 = vmatpush.msra.mxu3 %v174_v17 }
  0x1f   :  { %233 = vmatmul.msk.f32.gmra.mxu2 %vm79_vm0, %v66_v18  ;;  %188 = vmatpush.msra.mxu3 %v173_v19 }
  0x20   :  { %231 = vmatmul.msk.f32.gmra.mxu1 %vm79_vm0, %v66_v18 }
  0x21   :  { %229 = vmatmul.msk.f32.gmra.mxu0 %vm79_vm0, %v66_v18  ;;  %189 = vmatpush.msra.mxu3 %v172_v20 }
  0x23   :  { %190 = vmatpush.msra.mxu3 %v171_v21 }
  0x25   :  { %191 = vmatpush.msra.mxu3 %v170_v22 }
  0x27   :  { %192 = vmatpush.msra.mxu3 %v169_v23 }
  0x29   :  { %193 = vmatpush.msra.mxu3 %v168_v24 }
  0x2b   :  { %194 = vmatpush.msra.mxu3 %v167_v25 }
  0x2d   :  { %195 = vmatpush.msra.mxu3 %v166_v26 }
  0x2f   :  { %196 = vmatpush.msra.mxu3 %v165_v27 }
  0x31   :  { %197 = vmatpush.msra.mxu3 %v164_v28 }
  0x33   :  { %198 = vmatpush.msra.mxu3 %v163_v29 }
  0x95   :  { %v126_v30 = vpop.f32.mrf.mxu1 }
  0x96   :  { %v155_v31 = vadd.f32 1.0, %v126_v30  ;;  %v103_v32 = vpop.f32.mrf.mxu0 }
  0x98   :  { %v157_v33 = vmul.f32 %v155_v31, %v103_v32 }
  0x9a   :  { %v149_v34 = vpop.f32.mrf.mxu2 }
  0x9b   :  { %v159_v35 = vadd.f32 1.0, %v149_v34 }
  0x9d   :  { %v129_v36 = vpop.f32.mrf.mxu1  ;;  %v161_v37 = vmul.f32 %v159_v35, %v157_v33 }
  0x9e   :  { %v156_v38 = vadd.f32 1.0, %v129_v36  ;;  %v106_v39 = vpop.f32.mrf.mxu0 }
  0x9f   :  { %199 = vmatmul.f32.vlgmr.msra.gmra.mxu3 %v161_v37 }
  0xa0   :  { %v158_v40 = vmul.f32 %v156_v38, %v106_v39 }
  0xa2   :  { %v152_v41 = vpop.f32.mrf.mxu2 }
  0xa3   :  { %v160_v42 = vadd.f32 1.0, %v152_v41 }
  0xa5   :  { %v162_v43 = vmul.f32 %v160_v42, %v158_v40 }
  0xa7   :  { %202 = vmatmul.f32.gmra.mxu3 %v162_v43 }
 0x122   :  { %v200_v45 = vpop.f32.mrf.mxu3 }
 0x123   :  { %v201_v46 = vadd.f32 %v242_v44, %v200_v45 }
 0x125   :  { %206 = vst [vmem:[#allocation8] sm:$0xff] %v201_v46 }
 0x12a   :  { %v203_v47 = vpop.f32.mrf.mxu3 }
 0x12b   :  { %v204_v48 = vadd.f32 %v242_v44, %v203_v47 }
 0x12d   :  { %207 = vst [vmem:[#allocation8 + $0x8] sm:$0xff] %v204_v48 }
 0x12e   :  { %220 = dma.vmem_to_hbm [thread:$0]  %s213_s8, 256, %s215_s11, [#allocation4], %s349_s27, %s349_s27, %s350_s28  }
 0x12f   :  { %343 = dma.done.wait [#allocation4], 256  }
 0x130   :  { %344 = vsyncadd [#allocation4], 4294967040 }
 0x131   :  { %225 = vsyncpa [#allocation3], 1 }
 0x132   :  { %226 = vsyncpa [#allocation6], 1 }
 0x133   :  { %227 = vsyncpa [#allocation4], 1 }

</bundles_post_ra>
